<compile_context>
chip_gen: v7x
topology: tpu7x:2x2x1
jax: 0.10.0
libtpu: 0.0.40
codegen_flags: <defaults>
</compile_context>

<pallas_src>
import math

import jax
import jax.numpy as jnp
import numpy as np
from jax.experimental import pallas as pl
from jax.experimental.pallas import tpu as pltpu


def _crop_offsets(height: int, width: int, size: int, spacial_idx: int):
    """Static re-implementation of uniform_crop's offset logic (scale_size=None)."""
    assert spacial_idx in (0, 1, 2)
    y_offset = math.ceil((height - size) / 2)
    x_offset = math.ceil((width - size) / 2)
    if height <= width:
        if spacial_idx == 0:
            x_offset = 0
        elif spacial_idx == 2:
            x_offset = width - size
    else:
        if spacial_idx == 0:
            y_offset = 0
        elif spacial_idx == 2:
            y_offset = height - size
    return y_offset, x_offset


def _pick_t_block(T, C, H, W, S, nc, itemsize, budget_bytes=12 * 1024 * 1024):
    """Largest divisor of T whose (frame tile + crop tile) stays under budget.

    Budget is per single buffer; Pallas double-buffers inputs and outputs, so
    the real VMEM footprint is ~2x this — still well inside v7x's 64 MiB.
    """
    per_frame = C * (H * W + nc * S * S) * itemsize
    max_blk = max(1, budget_bytes // max(per_frame, 1))
    for tb in range(min(T, max_blk), 0, -1):
        if T % tb == 0:
            return tb
    return 1


def spacial_crop(videos: jax.Array, crop_size: int, num_crops: int = 3) -> jax.Array:
    """Pallas implementation of Spacial_Crop.forward.

    videos: [B, T, C, H, W]  ->  [B * num_crops, T, C, crop_size, crop_size]
    """
    if num_crops == 3:
        crop_directions = [0, 1, 2]
    elif num_crops == 1:
        crop_directions = [1]
    else:
        raise NotImplementedError("num_crops must be 1 or 3")

    B, T, C, H, W = videos.shape
    S = crop_size
    nc = len(crop_directions)
    itemsize = jnp.dtype(videos.dtype).itemsize

    # Compile-time (y_offset, x_offset) per crop direction.
    offs = [_crop_offsets(H, W, S, d) for d in crop_directions]

    T_blk = _pick_t_block(T, C, H, W, S, nc, itemsize)

    in_block_bytes = T_blk * C * H * W * itemsize
    out_block_bytes = nc * T_blk * C * S * S * itemsize
    # Double-buffered inputs + outputs, plus headroom; cap below v7x's 64 MiB.
    vmem_limit = min(max(4 * (in_block_bytes + out_block_bytes), 32 * 1024 * 1024),
                     60 * 1024 * 1024)

    def crop_kernel(x_ref, o_ref):
        # x_ref: (T_blk, C, H, W) frame tile in VMEM
        # o_ref: (nc, T_blk, C, S, S) crop tile
        # Static slice starts -> plain vld/vst of only the S x S window per crop;
        # the frame is read from HBM once and reused for all nc crops.
        for ci, (y0, x0) in enumerate(offs):
            o_ref[ci] = x_ref[:, :, y0:y0 + S, x0:x0 + S]

    in_spec = pl.BlockSpec(
        (pl.Squeezed(), T_blk, C, H, W),
        lambda b, t: (b, t, 0, 0, 0),
    )
    # Output rows [b*nc, (b+1)*nc) are written in one shot per (b, t) step.
    out_spec = pl.BlockSpec(
        (nc, T_blk, C, S, S),
        lambda b, t: (b, t, 0, 0, 0),
    )

    return pl.pallas_call(
        crop_kernel,
        out_shape=jax.ShapeDtypeStruct((B * nc, T, C, S, S), videos.dtype),
        grid_spec=pltpu.PrefetchScalarGridSpec(
            num_scalar_prefetch=0,
            grid=(B, T // T_blk),
            in_specs=[in_spec],
            out_specs=out_spec,
        ),
        compiler_params=pltpu.CompilerParams(
            dimension_semantics=("parallel", "parallel"),
            vmem_limit_bytes=int(vmem_limit),
        ),
    )(videos)


def _reference_spacial_crop(videos: np.ndarray, crop_size: int, num_crops: int = 3):
    """Pure-numpy mirror of the PyTorch forward, for verification."""
    dirs = [0, 1, 2] if num_crops == 3 else [1]
    H, W = videos.shape[3], videos.shape[4]
    res = []
    for b in range(videos.shape[0]):
        for d in dirs:
            y0, x0 = _crop_offsets(H, W, crop_size, d)
            res.append(videos[b, :, :, y0:y0 + crop_size, x0:x0 + crop_size])
    return np.stack(res, axis=0)


if __name__ == "__main__":
    # Spacial_Crop has no learnable parameters; only config (crop_size, num_crops).
    crop_size = 8

    key = jax.random.PRNGKey(0)
    # B=2 videos, T=3 frames, C=4 channels, H=12, W=16 (H <= W -> left/center/right vary x).
    videos = jax.random.normal(key, (2, 3, 4, 12, 16), dtype=jnp.float32)
    videos_np = np.asarray(videos)

    # 3-crop path.
    out3 = jax.block_until_ready(spacial_crop(videos, crop_size=crop_size, num_crops=3))
    ref3 = _reference_spacial_crop(videos_np, crop_size, num_crops=3)
    assert out3.shape == ref3.shape, (out3.shape, ref3.shape)
    np.testing.assert_allclose(np.asarray(out3), ref3, rtol=0, atol=0)

    # 1-crop (center-only) path.
    out1 = jax.block_until_ready(spacial_crop(videos, crop_size=crop_size, num_crops=1))
    ref1 = _reference_spacial_crop(videos_np, crop_size, num_crops=1)
    assert out1.shape == ref1.shape, (out1.shape, ref1.shape)
    np.testing.assert_allclose(np.asarray(out1), ref1, rtol=0, atol=0)

    print("KERNEL_OK")
</pallas_src>

<mosaic_0001>
module attributes {stable_mosaic.version = 11 : i64} {
  func.func @crop_kernel(%arg0: i32, %arg1: i32, %arg2: memref<1x3x4x12x16xf32, #tpu.memory_space<vmem>>, %arg3: memref<3x3x4x8x8xf32, #tpu.memory_space<vmem>>) attributes {dimension_semantics = [#tpu.dimension_semantics<parallel>, #tpu.dimension_semantics<parallel>], iteration_bounds = array<i64: 2, 1>, scalar_prefetch = 0 : i64, scratch_operands = 0 : i64, tpu.core_type = #tpu.core_type<tc>, window_params = [{transform_indices = @transform_0, window_bounds = array<i64: 1, 3, 4, 12, 16>}, {transform_indices = @transform_1, window_bounds = array<i64: 3, 3, 4, 8, 8>}]} {
    %c0 = arith.constant 0 : index
    %c0_0 = arith.constant 0 : index
    %c0_1 = arith.constant 0 : index
    %c2 = arith.constant 2 : index
    %c0_2 = arith.constant 0 : index
    %0 = vector.load %arg2[%c0, %c0_0, %c0_1, %c2, %c0_2] : memref<1x3x4x12x16xf32, #tpu.memory_space<vmem>>, vector<1x3x4x8x8xf32>
    %1 = vector.shape_cast %0 : vector<1x3x4x8x8xf32> to vector<3x4x8x8xf32>
    %c0_3 = arith.constant 0 : index
    %c0_4 = arith.constant 0 : index
    %c0_5 = arith.constant 0 : index
    %c0_6 = arith.constant 0 : index
    %c0_7 = arith.constant 0 : index
    %2 = vector.load %arg3[%c0_3, %c0_4, %c0_5, %c0_6, %c0_7] : memref<3x3x4x8x8xf32, #tpu.memory_space<vmem>>, vector<1x3x4x8x8xf32>
    %3 = vector.shape_cast %2 : vector<1x3x4x8x8xf32> to vector<3x4x8x8xf32>
    %4 = vector.shape_cast %1 : vector<3x4x8x8xf32> to vector<1x3x4x8x8xf32>
    tpu.vector_store %arg3[%c0_3, %c0_4, %c0_5, %c0_6, %c0_7], %4 {strides = array<i32>} : memref<3x3x4x8x8xf32, #tpu.memory_space<vmem>>, vector<1x3x4x8x8xf32>,
    %c0_8 = arith.constant 0 : index
    %c0_9 = arith.constant 0 : index
    %c0_10 = arith.constant 0 : index
    %c2_11 = arith.constant 2 : index
    %c4 = arith.constant 4 : index
    %5 = vector.load %arg2[%c0_8, %c0_9, %c0_10, %c2_11, %c4] : memref<1x3x4x12x16xf32, #tpu.memory_space<vmem>>, vector<1x3x4x8x8xf32>
    %6 = vector.shape_cast %5 : vector<1x3x4x8x8xf32> to vector<3x4x8x8xf32>
    %c1 = arith.constant 1 : index
    %c0_12 = arith.constant 0 : index
    %c0_13 = arith.constant 0 : index
    %c0_14 = arith.constant 0 : index
    %c0_15 = arith.constant 0 : index
    %7 = vector.load %arg3[%c1, %c0_12, %c0_13, %c0_14, %c0_15] : memref<3x3x4x8x8xf32, #tpu.memory_space<vmem>>, vector<1x3x4x8x8xf32>
    %8 = vector.shape_cast %7 : vector<1x3x4x8x8xf32> to vector<3x4x8x8xf32>
    %9 = vector.shape_cast %6 : vector<3x4x8x8xf32> to vector<1x3x4x8x8xf32>
    tpu.vector_store %arg3[%c1, %c0_12, %c0_13, %c0_14, %c0_15], %9 {strides = array<i32>} : memref<3x3x4x8x8xf32, #tpu.memory_space<vmem>>, vector<1x3x4x8x8xf32>,
    %c0_16 = arith.constant 0 : index
    %c0_17 = arith.constant 0 : index
    %c0_18 = arith.constant 0 : index
    %c2_19 = arith.constant 2 : index
    %c8 = arith.constant 8 : index
    %10 = vector.load %arg2[%c0_16, %c0_17, %c0_18, %c2_19, %c8] : memref<1x3x4x12x16xf32, #tpu.memory_space<vmem>>, vector<1x3x4x8x8xf32>
    %11 = vector.shape_cast %10 : vector<1x3x4x8x8xf32> to vector<3x4x8x8xf32>
    %c2_20 = arith.constant 2 : index
    %c0_21 = arith.constant 0 : index
    %c0_22 = arith.constant 0 : index
    %c0_23 = arith.constant 0 : index
    %c0_24 = arith.constant 0 : index
    %12 = vector.load %arg3[%c2_20, %c0_21, %c0_22, %c0_23, %c0_24] : memref<3x3x4x8x8xf32, #tpu.memory_space<vmem>>, vector<1x3x4x8x8xf32>
    %13 = vector.shape_cast %12 : vector<1x3x4x8x8xf32> to vector<3x4x8x8xf32>
    %14 = vector.shape_cast %11 : vector<3x4x8x8xf32> to vector<1x3x4x8x8xf32>
    tpu.vector_store %arg3[%c2_20, %c0_21, %c0_22, %c0_23, %c0_24], %14 {strides = array<i32>} : memref<3x3x4x8x8xf32, #tpu.memory_space<vmem>>, vector<1x3x4x8x8xf32>,
    return
  }
  func.func @transform_0(%arg0: i32, %arg1: i32) -> (i32, i32, i32, i32, i32) {
    %c0_i32 = arith.constant 0 : i32
    %c0_i32_0 = arith.constant 0 : i32
    %c0_i32_1 = arith.constant 0 : i32
    %c0_i32_2 = arith.constant 0 : i32
    return %arg0, %arg1, %c0_i32, %c0_i32_0, %c0_i32_1 : i32, i32, i32, i32, i32
  }
  func.func @transform_1(%arg0: i32, %arg1: i32) -> (i32, i32, i32, i32, i32) {
    %c0_i32 = arith.constant 0 : i32
    %c0_i32_0 = arith.constant 0 : i32
    %c0_i32_1 = arith.constant 0 : i32
    %c0_i32_2 = arith.constant 0 : i32
    return %arg0, %arg1, %c0_i32, %c0_i32_0, %c0_i32_1 : i32, i32, i32, i32, i32
  }
}

</mosaic_0001>

<bundles_post_ra>
// kernel: tpu_custom_call.1
= control target key start
LH: loop header
LB: loop body
LE: loop exit
PB: predicated region body
PF: predicated region fallthrough
CT: control target
= control target key end

     0   :  { %6 = vsyncpa [#allocation3], 0  ;;  %s818_s0 = inlined_call_operand.vmem [shape: f32[2,3,4,12,16], index: 0, kind: input, shape index: {}]   ;;  %s819_s1 = inlined_call_operand.hbm [shape: f32[6,3,4,8,8], index: 1, kind: output, shape index: {}]  }
   0x1   :  { %8 = vsyncpa [#allocation3 + $0x1], 0  ;;  %s612_s6 = smov 0   ;;  %s614_s7 = smov 0  }
   0x2   :  { %s616_s8 = smov 0   ;;  %s618_s9 = smov 0  }
   0x3   :  { %s620_s10 = smov 0   ;;  %s622_s11 = smov 0  }
   0x4 LB: > { %s421_s12 = sadd.s32 4294967295, %s595_s11   ;;  %s422_s13 = sadd.s32 4294967294, %s595_s11   ;;  %s595_s11 = sphi %s622_s11, %s14_s11   ;;  %s591_s10 = sphi %s620_s10, %s826_s10   ;;  %s587_s9 = sphi %s618_s9, %s825_s9   ;;  %s583_s8 = sphi %s616_s8, %s824_s8   ;;  %s579_s7 = sphi %s614_s7, %s823_s7   ;;  %s575_s6 = sphi %s612_s6, %s822_s6  }
   0x5   : > { %s26_s14 = sadd.s32 1, %s591_s10  ;;  %s63_s15 = sadd.s32 1, %s583_s8 }
   0x6   : > { %p28_p0 = scmp.ge.s32.totalorder %s26_s14, 2  ;;  %p73_p1 = scmp.ne.s32.totalorder %s583_s8, %s579_s7 }
   0x7   : > { %p74_p2 = scmp.eq.s32.totalorder %s421_s12, 1  ;;  %p79_p3 = scmp.ne.s32.totalorder %s579_s7, %s575_s6 }
   0x8   : > { %s828_s14 = smov (%p28_p0, %s26_s14), 0  ;;  %p80_p5 = scmp.eq.s32.totalorder %s422_s13, 1 }
   0x9   : > { %p652_p4 = por %p74_p2, %p73_p1  ;;  %s58_s17 = ssub.s32 %s591_s10, %s828_s14 }
   0xa   : > { %p425_p6 = scmp.ge.s32.totalorder %s595_s11, 1  ;;  %p61_p7 = scmp.eq.s32.totalorder %s58_s17, 0 }
   0xb   : > { %p659_p8 = por %p80_p5, %p79_p3  ;;  %p112_p9 = scmp.lt.s32.totalorder %s595_s11, 3 }
   0xc   : > { %s665_s19 = scalar_select %p61_p7, %s583_s8, %s63_s15  }
   0xd   : > { %p113_p10 = pnand %p425_p6, %p112_p9 }
   0xe   : > { %p138_p11 = scmp.lt.s32.totalorder (!%p113_p10), %s587_s9, 1  ;;  %s134_s20 = sand.u32 (!%p113_p10), 1, %s579_s7   ;;  %vm162_vm0 = vcmask (!%p113_p10), 64512  }
   0xf   : > { %116 = sbr.rel (%p113_p10) target bundleno = 204 (0xcc), region = 24  ;;  %s597_s27 = smov (!%p113_p10), 124  }
  0x10   : > { %s454_s22 = smul.u32 (!%p113_p10), 288, %s134_s20  ;;  %s598_s29 = smov (!%p113_p10), 120  }
  0x11   : > { %s463_s30 = smul.u32 (!%p113_p10), 4608, %s587_s9  ;;  %s599_s13 = smov (!%p113_p10), [#allocation2]  }
  0x12   : > { %s677_s28 = scalar_lea.vmem (!%p113_p10), [#allocation2], %s454_s22  ;;  %s521_s15 = sshll.u32 (!%p113_p10), %s599_s13, 4  ;;  %s522_s15 = int_to_ptr.vmem [resolvable:$false] %s521_s15 }
  0x13   : > { %s339_s2 = sshll.u32 (!%p113_p10), %s677_s28, 4  ;;  %s762_s5 = scalar_lea.hbm (!%p113_p10), %s819_s1, %s463_s30  ;;  %s764_s2 = int_to_ptr.vmem [resolvable:$true] %s339_s2 }
  0x14   : > { %s517_s12 = scalar_lea.vmem (!%p113_p10), %s764_s2, 4608  ;;  %s523_s17 = scalar_lea.vmem (!%p113_p10), %s522_s15, 9216 }
  0x15   : > { %p518_p12 = scmp.ne.s32.totalorder (!%p113_p10), %s764_s2, %s517_s12  ;;  %p524_p1 = scmp.lt.s32.totalorder (!%p113_p10), %s764_s2, %s522_s15 }
  0x16   : > { %s139_s21 = scalar_select %p138_p11, %s587_s9, 1 }
  0x17   : > { %s772_s9 = scalar_lea.sflag [#allocation3], %s134_s20  ;;  %p519_p13 = pnand %p518_p12, %p652_p4 }
  0x18   : > { %s455_s23 = smul.u32 192, %s139_s21  ;;  %p525_p2 = scmp.lt.s32.totalorder %s523_s17, %s517_s12 }
  0x19   : > { %p520_p0 = pneg %p519_p13 }
  0x1a   : > { %s146_s26 = scalar_lea.vmem %s818_s0, %s455_s23  ;;  %p526_p3 = por %p525_p2, %p524_p1 }
  0x1b   : > { %v177_v0 = vld [vmem:[%s146_s26 + $0x22] sm:$0xff]  ;;  %v178_v2 = vld [vmem:[%s146_s26 + $0x32] sm:$0xff] }
  0x1c   : > { %v175_v1 = vld [vmem:[%s146_s26 + $0x2] sm:$0xff]  ;;  %203 = vrot.lane.b32.xlu1 %v177_v0, %s597_s27  ;;  %v176_v3 = vld [vmem:[%s146_s26 + $0x12] sm:$0xff]  ;;  %165 = vst.msk [vmem:[%s677_s28 + $0x10] sm:$0xff] %vm162_vm0, %v177_v0  ;;  %p527_p5 = pnand %p526_p3, %p520_p0 }
  0x1d   : > { %199 = vrot.lane.b32.xlu0 %v175_v1, %s597_s27  ;;  %v180_v4 = vld [vmem:[%s146_s26 + $0x52] sm:$0xff]  ;;  %163 = vst.msk [vmem:[%s677_s28] sm:$0xff] %vm162_vm0, %v175_v1  ;;  %166 = vst.msk [vmem:[%s677_s28 + $0x18] sm:$0xff] %vm162_vm0, %v178_v2 }
  0x1e   : > { %v179_v5 = vld [vmem:[%s146_s26 + $0x42] sm:$0xff]  ;;  %v182_v6 = vld [vmem:[%s146_s26 + $0x72] sm:$0xff]  ;;  %164 = vst.msk [vmem:[%s677_s28 + $0x8] sm:$0xff] %vm162_vm0, %v176_v3  ;;  %168 = vst.msk [vmem:[%s677_s28 + $0x28] sm:$0xff] %vm162_vm0, %v180_v4 }
  0x1f   : > { %v181_v7 = vld [vmem:[%s146_s26 + $0x62] sm:$0xff]  ;;  %v184_v8 = vld [vmem:[%s146_s26 + $0x92] sm:$0xff]  ;;  %167 = vst.msk [vmem:[%s677_s28 + $0x20] sm:$0xff] %vm162_vm0, %v179_v5  ;;  %170 = vst.msk [vmem:[%s677_s28 + $0x38] sm:$0xff] %vm162_vm0, %v182_v6 }
  0x20   : > { %v183_v9 = vld [vmem:[%s146_s26 + $0x82] sm:$0xff]  ;;  %v186_v10 = vld [vmem:[%s146_s26 + $0xb2] sm:$0xff]  ;;  %169 = vst.msk [vmem:[%s677_s28 + $0x30] sm:$0xff] %vm162_vm0, %v181_v7  ;;  %172 = vst.msk [vmem:[%s677_s28 + $0x48] sm:$0xff] %vm162_vm0, %v184_v8 }
  0x21   : > { %v185_v11 = vld [vmem:[%s146_s26 + $0xa2] sm:$0xff]  ;;  %171 = vst.msk [vmem:[%s677_s28 + $0x40] sm:$0xff] %vm162_vm0, %v183_v9  ;;  %174 = vst.msk [vmem:[%s677_s28 + $0x58] sm:$0xff] %vm162_vm0, %v186_v10  ;;  %205 = vrot.lane.b32.xlu1 %v178_v2, %s597_s27 }
  0x22   : > { %201 = vrot.lane.b32.xlu0 %v176_v3, %s597_s27  ;;  %173 = vst.msk [vmem:[%s677_s28 + $0x50] sm:$0xff] %vm162_vm0, %v185_v11 }
  0x25   : > { %209 = vrot.lane.b32.xlu1 %v180_v4, %s597_s27 }
  0x26   : > { %207 = vrot.lane.b32.xlu0 %v179_v5, %s597_s27 }
  0x29   : > { %213 = vrot.lane.b32.xlu1 %v182_v6, %s597_s27 }
  0x2a   : > { %211 = vrot.lane.b32.xlu0 %v181_v7, %s597_s27 }
  0x2d   : > { %217 = vrot.lane.b32.xlu1 %v184_v8, %s597_s27 }
  0x2e   : > { %215 = vrot.lane.b32.xlu0 %v183_v9, %s597_s27 }
  0x31   : > { %221 = vrot.lane.b32.xlu1 %v186_v10, %s597_s27 }
  0x32   : > { %219 = vrot.lane.b32.xlu0 %v185_v11, %s597_s27 }
  0x35   : > { %274 = vrot.lane.b32.xlu1 %v176_v3, %s598_s29 }
  0x36   : > { %272 = vrot.lane.b32.xlu0 %v175_v1, %s598_s29 }
  0x39   : > { %278 = vrot.lane.b32.xlu1 %v178_v2, %s598_s29 }
  0x3a   : > { %276 = vrot.lane.b32.xlu0 %v177_v0, %s598_s29 }
  0x3d   : > { %282 = vrot.lane.b32.xlu1 %v180_v4, %s598_s29 }
  0x3e   : > { %280 = vrot.lane.b32.xlu0 %v179_v5, %s598_s29 }
  0x41   : > { %286 = vrot.lane.b32.xlu1 %v182_v6, %s598_s29 }
  0x42   : > { %284 = vrot.lane.b32.xlu0 %v181_v7, %s598_s29 }
  0x45   : > { %290 = vrot.lane.b32.xlu1 %v184_v8, %s598_s29 }
  0x46   : > { %288 = vrot.lane.b32.xlu0 %v183_v9, %s598_s29 }
  0x49   : > { %294 = vrot.lane.b32.xlu1 %v186_v10, %s598_s29 }
  0x4a   : > { %292 = vrot.lane.b32.xlu0 %v185_v11, %s598_s29 }
  0x8e   : > { %v204_v12 = vpop.permute.xlu1 %203 }
  0x8f   : > { %v200_v13 = vpop.permute.xlu0 %199  ;;  %429 = vst.msk [vmem:[%s677_s28 + $0x70] sm:$0xff] %vm162_vm0, %v204_v12 }
  0x90   : > { %427 = vst.msk [vmem:[%s677_s28 + $0x60] sm:$0xff] %vm162_vm0, %v200_v13 }
  0x93   : > { %v206_v14 = vpop.permute.xlu1 %205 }
  0x94   : > { %v202_v15 = vpop.permute.xlu0 %201  ;;  %430 = vst.msk [vmem:[%s677_s28 + $0x78] sm:$0xff] %vm162_vm0, %v206_v14 }
  0x95   : > { %428 = vst.msk [vmem:[%s677_s28 + $0x68] sm:$0xff] %vm162_vm0, %v202_v15 }
  0x97   : > { %v210_v16 = vpop.permute.xlu1 %209 }
  0x98   : > { %v208_v17 = vpop.permute.xlu0 %207  ;;  %432 = vst.msk [vmem:[%s677_s28 + $0x88] sm:$0xff] %vm162_vm0, %v210_v16 }
  0x99   : > { %431 = vst.msk [vmem:[%s677_s28 + $0x80] sm:$0xff] %vm162_vm0, %v208_v17 }
  0x9b   : > { %v214_v18 = vpop.permute.xlu1 %213 }
  0x9c   : > { %v212_v19 = vpop.permute.xlu0 %211  ;;  %434 = vst.msk [vmem:[%s677_s28 + $0x98] sm:$0xff] %vm162_vm0, %v214_v18 }
  0x9d   : > { %433 = vst.msk [vmem:[%s677_s28 + $0x90] sm:$0xff] %vm162_vm0, %v212_v19 }
  0x9f   : > { %v218_v20 = vpop.permute.xlu1 %217 }
  0xa0   : > { %v216_v21 = vpop.permute.xlu0 %215  ;;  %436 = vst.msk [vmem:[%s677_s28 + $0xa8] sm:$0xff] %vm162_vm0, %v218_v20 }
  0xa1   : > { %435 = vst.msk [vmem:[%s677_s28 + $0xa0] sm:$0xff] %vm162_vm0, %v216_v21 }
  0xa3   : > { %v222_v22 = vpop.permute.xlu1 %221 }
  0xa4   : > { %v220_v23 = vpop.permute.xlu0 %219  ;;  %438 = vst.msk [vmem:[%s677_s28 + $0xb8] sm:$0xff] %vm162_vm0, %v222_v22 }
  0xa5   : > { %437 = vst.msk [vmem:[%s677_s28 + $0xb0] sm:$0xff] %vm162_vm0, %v220_v23 }
  0xa7   : > { %v275_v24 = vpop.permute.xlu1 %274 }
  0xa8   : > { %v273_v25 = vpop.permute.xlu0 %272  ;;  %440 = vst.msk [vmem:[%s677_s28 + $0xc8] sm:$0xff] %vm162_vm0, %v275_v24 }
  0xa9   : > { %439 = vst.msk [vmem:[%s677_s28 + $0xc0] sm:$0xff] %vm162_vm0, %v273_v25 }
  0xab   : > { %v279_v26 = vpop.permute.xlu1 %278 }
  0xac   : > { %v277_v27 = vpop.permute.xlu0 %276  ;;  %442 = vst.msk [vmem:[%s677_s28 + $0xd8] sm:$0xff] %vm162_vm0, %v279_v26 }
  0xad   : > { %441 = vst.msk [vmem:[%s677_s28 + $0xd0] sm:$0xff] %vm162_vm0, %v277_v27 }
  0xaf   : > { %v283_v28 = vpop.permute.xlu1 %282 }
  0xb0   : > { %v281_v29 = vpop.permute.xlu0 %280  ;;  %444 = vst.msk [vmem:[%s677_s28 + $0xe8] sm:$0xff] %vm162_vm0, %v283_v28 }
  0xb1   : > { %443 = vst.msk [vmem:[%s677_s28 + $0xe0] sm:$0xff] %vm162_vm0, %v281_v29 }
  0xb3   : > { %v287_v30 = vpop.permute.xlu1 %286 }
  0xb4   : > { %v285_v31 = vpop.permute.xlu0 %284  ;;  %446 = vst.msk [vmem:[%s677_s28 + $0xf8] sm:$0xff] %vm162_vm0, %v287_v30 }
  0xb5   : > { %445 = vst.msk [vmem:[%s677_s28 + $0xf0] sm:$0xff] %vm162_vm0, %v285_v31 }
  0xb7   : > { %v291_v32 = vpop.permute.xlu1 %290 }
  0xb8   : > { %v289_v33 = vpop.permute.xlu0 %288  ;;  %448 = vst.msk [vmem:[%s677_s28 + $0x108] sm:$0xff] %vm162_vm0, %v291_v32 }
  0xb9   : > { %447 = vst.msk [vmem:[%s677_s28 + $0x100] sm:$0xff] %vm162_vm0, %v289_v33 }
  0xbb   : > { %v295_v34 = vpop.permute.xlu1 %294 }
  0xbc   : > { %v293_v35 = vpop.permute.xlu0 %292  ;;  %450 = vst.msk [vmem:[%s677_s28 + $0x118] sm:$0xff] %vm162_vm0, %v295_v34 }
  0xbd   : > { %449 = vst.msk [vmem:[%s677_s28 + $0x110] sm:$0xff] %vm162_vm0, %v293_v35 }
  0xbe   : > { %530 = shalt.err (!%p527_p5)
}
  0xbf   : > { %s531_s20 = scalar_lea.hbm %s762_s5, 4608  ;;  %s535_s23 = scalar_lea.hbm %s819_s1, 9216 }
  0xc0   : > { %p532_p6 = scmp.ne.s32.totalorder %s762_s5, %s531_s20  ;;  %p536_p10 = scmp.lt.u32.totalorder %s762_s5, %s819_s1 }
  0xc1   : > { %p537_p11 = scmp.lt.u32.totalorder %s535_s23, %s531_s20  ;;  %p539_p13 = scmp.lt.u32.totalorder %s531_s20, %s762_s5 }
  0xc2   : > { %p533_p7 = pnand %p532_p6, %p652_p4 }
  0xc3   : > { %p538_p12 = por %p537_p11, %p536_p10 }
  0xc4   : > { %p534_p9 = pneg %p533_p7 }
  0xc5   : > { %p540_p0 = por %p539_p13, %p538_p12 }
  0xc7   : > { %p541_p1 = pnand %p540_p0, %p534_p9 }
  0xc9   : > { %544 = shalt.err (!%p541_p1)
}
  0xca   : > { %s600_s26 = smov 128   ;;  %s601_s27 = smov 8  }
  0xcb   : > { %457 = dma.vmem_to_hbm [thread:$0]  (%p652_p4), %s764_s2, 4608, %s762_s5, %s772_s9, %s600_s26, %s600_s26, %s601_s27  }
  0xcc PF: > { %p464_p2 = scmp.ge.s32.totalorder %s595_s11, 2  ;;  %s354_s28 = sand.u32 1, %s575_s6  }
  0xcd   : > { %s355_s29 = scalar_lea.sflag [#allocation3], %s354_s28 }
  0xce   : > { %p460_p3 = pnand %p464_p2, %p659_p8 }
  0xd0   : > { %570 = dma.done.wait (!%p460_p3), %s355_s29, 4608  }
  0xd1   : > { %572 = vsyncadd (!%p460_p3), %s355_s29, 4294962688  ;;  %s14_s11 = sadd.s32 1, %s595_s11   ;;  %s822_s6 = smov %s579_s7 }
  0xd2   : > { %p11_p5 = scmp.ge.s32.totalorder %s14_s11, 4   ;;  %s823_s7 = smov %s583_s8 }
  0xd3   : > { %s824_s8 = smov %s665_s19  ;;  %s825_s9 = smov %s591_s10 }
  0xd4   : > { %s826_s10 = smov %s828_s14  ;;  %13 = sbr.rel (!%p11_p5) target bundleno = 4 (0x4), region = 61 }
  0xdb   :  { %360 = vsyncpa [#allocation3], 1 }
  0xdc   :  { %362 = vsyncpa [#allocation3 + $0x1], 1 }

</bundles_post_ra>
